<compile_context>
chip_gen: v7x
topology: tpu7x:2x2x1
jax: 0.10.0
libtpu: 0.0.40
codegen_flags: <defaults>
</compile_context>

<pallas_src>
import math
import functools

import jax
import jax.numpy as jnp
from jax.experimental import pallas as pl
from jax.experimental.pallas import tpu as pltpu


# ----------------------------- in-kernel helpers -----------------------------

def _layernorm(x, w, b, eps):
    # PyTorch nn.LayerNorm over last dim, biased variance. f32 math.
    mu = jnp.mean(x, axis=-1, keepdims=True)
    var = jnp.mean((x - mu) ** 2, axis=-1, keepdims=True)
    return (x - mu) * jax.lax.rsqrt(var + eps) * w + b


def _gelu_new(x):
    # ALBERT default hidden_act = "gelu_new" (tanh approximation).
    c = math.sqrt(2.0 / math.pi)
    return 0.5 * x * (1.0 + jnp.tanh(c * (x + 0.044715 * x * x * x)))


def _round_up(x, m):
    return (x + m - 1) // m * m


# --------------------------------- kernels -----------------------------------

def embed_map_kernel(x_ref, w_ref, b_ref, o_ref):
    # x_ref: (rows, E) f32, w_ref: (E, H) bf16, b_ref: (1, H) f32, o_ref: (rows, H) f32
    xb = x_ref[...].astype(jnp.bfloat16)
    o_ref[...] = jnp.dot(xb, w_ref[...],
                         preferred_element_type=jnp.float32) + b_ref[...]


def albert_stack_kernel(h_ref,
                        wq_ref, bq_ref, wk_ref, bk_ref, wv_ref, bv_ref,
                        wd3_ref, bd_ref, ln1w_ref, ln1b_ref,
                        wf1_ref, bf1_ref, wf2_ref, bf2_ref,
                        ln2w_ref, ln2b_ref,
                        o_ref,
                        h_sc,
                        *, num_heads, head_dim, eps, ffn_chunk):
    """One ALBERT layer per grid step; grid = (batch, layer).

    Weights are shared across layers (constant index_maps, single-buffered ->
    resident in VMEM).  The hidden state is carried across the layer axis in
    the h_sc VMEM scratch.  Only 2D matmuls are used (no 3D transposes,
    reshapes or batched dot_generals): the head split is a static lane slice
    and the head merge is folded into the output projection accumulation.
    """
    S, H = h_sc.shape
    layer = pl.program_id(1)

    # Load the embedded hidden state into the resident scratch on layer 0.
    @pl.when(layer == 0)
    def _():
        h_sc[...] = h_ref[0]

    x = h_sc[...]                                   # (S, H) f32
    xb = x.astype(jnp.bfloat16)

    # ---- Q, K, V projections: full-width matmuls (full MXU N dim) ----
    q = jnp.dot(xb, wq_ref[...], preferred_element_type=jnp.float32) + bq_ref[...]
    k = jnp.dot(xb, wk_ref[...], preferred_element_type=jnp.float32) + bk_ref[...]
    v = jnp.dot(xb, wv_ref[...], preferred_element_type=jnp.float32) + bv_ref[...]

    scale = 1.0 / math.sqrt(head_dim)

    # ---- per-head attention, merge-heads folded into the dense projection ----
    # projected = sum_h softmax(Q_h K_h^T / sqrt(d)) V_h @ Wd[h]
    # (== torch.einsum('bfnd,ndh->bfh', context, dense.weight.t().view(nh,hd,H)))
    projected = jnp.zeros((S, H), jnp.float32)
    for h in range(num_heads):
        sl = slice(h * head_dim, (h + 1) * head_dim)
        q_h = q[:, sl].astype(jnp.bfloat16)          # (S, hd)
        k_h = k[:, sl].astype(jnp.bfloat16)          # (S, hd)
        v_h = v[:, sl].astype(jnp.bfloat16)          # (S, hd)

        # scores_h = q_h @ k_h^T  (contract last dims; f32 accumulate)
        s_h = jax.lax.dot_general(
            q_h, k_h, (((1,), (1,)), ((), ())),
            preferred_element_type=jnp.float32) * scale       # (S, S) f32
        s_h = s_h - jnp.max(s_h, axis=-1, keepdims=True)
        e_h = jnp.exp(s_h)
        p_h = e_h / jnp.sum(e_h, axis=-1, keepdims=True)      # exact f32 softmax

        ctx_h = jnp.dot(p_h.astype(jnp.bfloat16), v_h,
                        preferred_element_type=jnp.float32)   # (S, hd) f32
        projected = projected + jnp.dot(ctx_h.astype(jnp.bfloat16), wd3_ref[h],
                                        preferred_element_type=jnp.float32)
    projected = projected + bd_ref[...]

    # ---- attention LayerNorm (residual), f32 ----
    attn_out = _layernorm(x + projected, ln1w_ref[...], ln1b_ref[...], eps)

    # ---- FFN tiled over the intermediate dim (bounded live intermediate) ----
    attn_bf = attn_out.astype(jnp.bfloat16)
    intermediate = wf1_ref.shape[1]
    ffn = jnp.zeros((S, H), jnp.float32)
    for c in range(intermediate // ffn_chunk):
        csl = slice(c * ffn_chunk, (c + 1) * ffn_chunk)
        a = jnp.dot(attn_bf, wf1_ref[:, csl],
                    preferred_element_type=jnp.float32) + bf1_ref[:, csl]
        a = _gelu_new(a)                             # f32 (safe on v5e's f32-only EUP)
        ffn = ffn + jnp.dot(a.astype(jnp.bfloat16), wf2_ref[csl, :],
                            preferred_element_type=jnp.float32)
    ffn = ffn + bf2_ref[...]

    # ---- full layer LayerNorm (residual), f32 ----
    y = _layernorm(ffn + attn_out, ln2w_ref[...], ln2b_ref[...], eps)
    h_sc[...] = y

    # Write the HBM output only after the final layer (revisited out block).
    @pl.when(layer == pl.num_programs(1) - 1)
    def _():
        o_ref[0] = y


# --------------------------------- wrappers ----------------------------------

def _resident_spec(shape):
    """Constant index_map + single buffering: weight stays resident in VMEM."""
    nd = len(shape)
    return pl.BlockSpec(shape, lambda *_args, _nd=nd: (0,) * _nd,
                        pipeline_mode=pl.Buffered(1))


def embedding_hidden_mapping_in(x, w_t_bf16, b):
    # x: (B, S, E) f32, w_t: (E, H) bf16, b: (1, H) f32 -> (B, S, H) f32
    B, S, E = x.shape
    H = w_t_bf16.shape[1]
    rows = B * S
    x2 = x.reshape(rows, E)

    # Padded cdiv row tiling (no `tile = rows` footgun); 512-row, 8-aligned tiles.
    tile = min(512, _round_up(rows, 8))
    rows_p = _round_up(rows, tile)
    if rows_p != rows:
        x2 = jnp.pad(x2, ((0, rows_p - rows), (0, 0)))

    ce = pl.CostEstimate(flops=int(2 * rows_p * E * H),
                         transcendentals=0,
                         bytes_accessed=int(rows_p * E * 4 + E * H * 2
                                            + H * 4 + rows_p * H * 4))
    out = pl.pallas_call(
        embed_map_kernel,
        out_shape=jax.ShapeDtypeStruct((rows_p, H), jnp.float32),
        grid=(rows_p // tile,),
        in_specs=[
            pl.BlockSpec((tile, E), lambda r: (r, 0)),
            _resident_spec((E, H)),
            _resident_spec((1, H)),
        ],
        out_specs=pl.BlockSpec((tile, H), lambda r: (r, 0)),
        compiler_params=pltpu.CompilerParams(dimension_semantics=("parallel",)),
        cost_estimate=ce,
    )(x2, w_t_bf16, b)
    return out[:rows].reshape(B, S, H)


def albert_encoder(hidden, params, *, num_layers, num_heads, head_dim, eps):
    """All ALBERT layers (shared weights) in a single fused pallas_call."""
    B, S, H = hidden.shape
    I = params["wf1_t"].shape[1]

    # FFN chunk: 256-multiple where possible (v6e/v7x MXU is 256 wide).
    ffn_chunk = next((c for c in (1024, 512, 256, 128) if I >= c and I % c == 0), I)

    # dense.weight.t() viewed as (nh, hd, H) so merge-heads folds into the
    # projection accumulation (no ctx transpose / concat inside the kernel).
    wd3 = params["wd_t"].reshape(num_heads, head_dim, H)

    weights = [
        params["wq_t"], params["bq"], params["wk_t"], params["bk"],
        params["wv_t"], params["bv"], wd3, params["bd"],
        params["ln1_w"], params["ln1_b"],
        params["wf1_t"], params["bf1"], params["wf2_t"], params["bf2"],
        params["ln2_w"], params["ln2_b"],
    ]

    kernel = functools.partial(albert_stack_kernel,
                               num_heads=num_heads, head_dim=head_dim,
                               eps=eps, ffn_chunk=ffn_chunk)

    # --- VMEM budget: single-buffered weights + IO blocks + activation temps.
    weight_bytes = sum(int(w.size) * w.dtype.itemsize for w in weights)
    io_bytes = 3 * S * H * 4                       # hidden in block, out block, h_sc
    act_bytes = (6 * S * H * 4                     # x, q, k, v, attn_out, ffn acc
                 + 3 * S * S * 4                   # one head's scores / exp / probs
                 + 2 * S * ffn_chunk * 4)          # one FFN chunk (f32 + bf16 copy)
    vmem_needed = weight_bytes + io_bytes + act_bytes
    vmem_limit = int(min(48 * 1024 * 1024,
                         max(32 * 1024 * 1024, vmem_needed + 12 * 1024 * 1024)))

    flops_per_layer = B * (8 * S * H * H + 4 * S * S * H + 4 * S * H * I)
    trans_per_layer = B * (num_heads * S * S + S * I)      # exp + tanh
    ce = pl.CostEstimate(
        flops=int(num_layers * flops_per_layer),
        transcendentals=int(num_layers * trans_per_layer),
        bytes_accessed=int(weight_bytes + 2 * B * S * H * 4),
    )

    return pl.pallas_call(
        kernel,
        out_shape=jax.ShapeDtypeStruct((B, S, H), jnp.float32),
        grid=(B, num_layers),
        in_specs=[
            # Hidden input: only read at layer==0, single-buffered to save VMEM.
            pl.BlockSpec((1, S, H), lambda b, l: (b, 0, 0),
                         pipeline_mode=pl.Buffered(1)),
        ] + [_resident_spec(w.shape) for w in weights],
        out_specs=pl.BlockSpec((1, S, H), lambda b, l: (b, 0, 0)),
        scratch_shapes=[pltpu.VMEM((S, H), jnp.float32)],
        compiler_params=pltpu.CompilerParams(
            # Batch axis is the only parallel axis (layers are a true chain);
            # keep B >= 2 so v7x's two TensorCores are both busy.
            dimension_semantics=("parallel", "arbitrary"),
            vmem_limit_bytes=vmem_limit),
        cost_estimate=ce,
    )(hidden, *weights)


def albert_transformer_forward(hidden_states, params, config):
    """Equivalent of AlbertTransformer.forward(hidden_states) with
    attention_mask=None, head_mask=None, output_* = False."""
    h = embedding_hidden_mapping_in(hidden_states,
                                    params["emb_w_t"], params["emb_b"])
    num_heads = config["num_attention_heads"]
    head_dim = config["hidden_size"] // num_heads
    # ALBERT: every layer in every group shares the same parameter set.
    total_layers = config["num_hidden_layers"] * config["inner_group_num"]
    h = albert_encoder(h, params["layer"],
                       num_layers=total_layers, num_heads=num_heads,
                       head_dim=head_dim, eps=config["layer_norm_eps"])
    return (h,)


# ------------------------------ parameter init --------------------------------

def init_params(key, config):
    E = config["embedding_size"]
    H = config["hidden_size"]
    I = config["intermediate_size"]
    ks = jax.random.split(key, 16)
    std = 0.02

    def lin(k, fin, fout):
        # torch nn.Linear weight is (out, in); store transposed (in, out), bf16 for MXU.
        w = (jax.random.normal(k, (fout, fin), jnp.float32) * std)
        b = jnp.zeros((1, fout), jnp.float32)
        return w.T.astype(jnp.bfloat16), b

    emb_w_t, emb_b = lin(ks[0], E, H)
    wq_t, bq = lin(ks[1], H, H)
    wk_t, bk = lin(ks[2], H, H)
    wv_t, bv = lin(ks[3], H, H)
    wd_t, bd = lin(ks[4], H, H)
    wf1_t, bf1 = lin(ks[5], H, I)
    wf2_t, bf2 = lin(ks[6], I, H)

    layer = dict(
        wq_t=wq_t, bq=bq, wk_t=wk_t, bk=bk, wv_t=wv_t, bv=bv,
        wd_t=wd_t, bd=bd,
        ln1_w=jnp.ones((1, H), jnp.float32), ln1_b=jnp.zeros((1, H), jnp.float32),
        wf1_t=wf1_t, bf1=bf1, wf2_t=wf2_t, bf2=bf2,
        ln2_w=jnp.ones((1, H), jnp.float32), ln2_b=jnp.zeros((1, H), jnp.float32),
    )
    return dict(emb_w_t=emb_w_t, emb_b=emb_b, layer=layer)


# ------------------------------ pure-JAX reference -----------------------------

def reference_forward(x, params, config):
    """f32 reference replicating the PyTorch module (weights cast back to f32)."""
    nh = config["num_attention_heads"]
    H = config["hidden_size"]
    hd = H // nh
    eps = config["layer_norm_eps"]

    def lin(t, w, b):
        return t @ w.astype(jnp.float32) + b

    def ln(t, w, b):
        mu = jnp.mean(t, -1, keepdims=True)
        var = jnp.mean((t - mu) ** 2, -1, keepdims=True)
        return (t - mu) / jnp.sqrt(var + eps) * w + b

    h = lin(x, params["emb_w_t"], params["emb_b"])
    p = params["layer"]
    B, S, _ = h.shape
    total_layers = config["num_hidden_layers"] * config["inner_group_num"]
    for _ in range(total_layers):
        q = lin(h, p["wq_t"], p["bq"])
        k = lin(h, p["wk_t"], p["bk"])
        v = lin(h, p["wv_t"], p["bv"])

        def split(t):
            return t.reshape(B, S, nh, hd).transpose(0, 2, 1, 3)

        qh, kh, vh = split(q), split(k), split(v)
        sc = jnp.einsum('bhqd,bhkd->bhqk', qh, kh) / math.sqrt(hd)
        pr = jax.nn.softmax(sc, axis=-1)
        ctx = jnp.einsum('bhqk,bhkd->bhqd', pr, vh).transpose(0, 2, 1, 3).reshape(B, S, H)
        proj = lin(ctx, p["wd_t"], p["bd"])
        attn = ln(h + proj, p["ln1_w"], p["ln1_b"])
        f = lin(attn, p["wf1_t"], p["bf1"])
        f = _gelu_new(f)
        f = lin(f, p["wf2_t"], p["bf2"])
        h = ln(f + attn, p["ln2_w"], p["ln2_b"])
    return h


# ----------------------------------- main -------------------------------------

if __name__ == "__main__":
    config = dict(
        embedding_size=16,
        hidden_size=32,
        intermediate_size=64,
        num_attention_heads=4,
        num_hidden_layers=2,
        num_hidden_groups=1,
        inner_group_num=1,
        layer_norm_eps=1e-12,
        hidden_act="gelu_new",
        output_attentions=False,
        output_hidden_states=False,
    )

    key = jax.random.PRNGKey(0)
    k_x, k_p = jax.random.split(key)
    B, S = 2, 8
    x = jax.random.normal(k_x, (B, S, config["embedding_size"]), jnp.float32)

    params = init_params(k_p, config)

    out = albert_transformer_forward(x, params, config)[0]
    out = jax.block_until_ready(out)

    assert out.shape == (B, S, config["hidden_size"])
    assert bool(jnp.all(jnp.isfinite(out)))

    # Kernel uses bf16 MXU inputs (f32 accumulate) + exact f32 softmax / LN.
    ref = reference_forward(x, params, config)
    assert bool(jnp.allclose(out, ref, rtol=1e-1, atol=1e-1))

    print("KERNEL_OK")
</pallas_src>

<mosaic_0001>
module attributes {stable_mosaic.version = 11 : i64} {
  func.func @embed_map_kernel(%arg0: i32, %arg1: memref<16x16xf32, #tpu.memory_space<vmem>>, %arg2: memref<16x32xbf16, #tpu.memory_space<vmem>>, %arg3: memref<1x32xf32, #tpu.memory_space<vmem>>, %arg4: memref<16x32xf32, #tpu.memory_space<vmem>>) attributes {dimension_semantics = [#tpu.dimension_semantics<parallel>], iteration_bounds = array<i64: 1>, scalar_prefetch = 0 : i64, scratch_operands = 0 : i64, tpu.core_type = #tpu.core_type<tc>, window_params = [{transform_indices = @transform_0, window_bounds = array<i64: 16, 16>}, {pipeline_mode = #tpu.pipeline_mode<synchronous>, transform_indices = @transform_1, window_bounds = array<i64: 16, 32>}, {pipeline_mode = #tpu.pipeline_mode<synchronous>, transform_indices = @transform_2, window_bounds = array<i64: 1, 32>}, {transform_indices = @transform_3, window_bounds = array<i64: 16, 32>}]} {
    %c0 = arith.constant 0 : index
    %c0_0 = arith.constant 0 : index
    %0 = vector.load %arg1[%c0, %c0_0] : memref<16x16xf32, #tpu.memory_space<vmem>>, vector<16x16xf32>
    %1 = arith.truncf %0 : vector<16x16xf32> to vector<16x16xbf16>
    %c0_1 = arith.constant 0 : index
    %c0_2 = arith.constant 0 : index
    %2 = vector.load %arg2[%c0_1, %c0_2] : memref<16x32xbf16, #tpu.memory_space<vmem>>, vector<16x32xbf16>
    %cst = arith.constant dense<0.000000e+00> : vector<16x32xf32>
    %3 = tpu.matmul %1, %2, %cst {dimension_numbers = #tpu.dot_dimension_numbers<[1], [0], [0], [1], [0, 0, 1, 1], [], []>} : vector<16x16xbf16>, vector<16x32xbf16>, vector<16x32xf32> -> vector<16x32xf32>
    %c0_3 = arith.constant 0 : index
    %c0_4 = arith.constant 0 : index
    %4 = vector.load %arg3[%c0_3, %c0_4] : memref<1x32xf32, #tpu.memory_space<vmem>>, vector<1x32xf32>
    %5 = vector.broadcast %4 : vector<1x32xf32> to vector<16x32xf32>
    %6 = arith.addf %3, %5 : vector<16x32xf32>
    %c0_5 = arith.constant 0 : index
    %c0_6 = arith.constant 0 : index
    %7 = vector.load %arg4[%c0_5, %c0_6] : memref<16x32xf32, #tpu.memory_space<vmem>>, vector<16x32xf32>
    tpu.vector_store %arg4[%c0_5, %c0_6], %6 {strides = array<i32>} : memref<16x32xf32, #tpu.memory_space<vmem>>, vector<16x32xf32>,
    return
  }
  func.func @transform_0(%arg0: i32) -> (i32, i32) {
    %c0_i32 = arith.constant 0 : i32
    %c0_i32_0 = arith.constant 0 : i32
    return %arg0, %c0_i32 : i32, i32
  }
  func.func @transform_1(%arg0: i32) -> (i32, i32) {
    %c0_i32 = arith.constant 0 : i32
    %c0_i32_0 = arith.constant 0 : i32
    %c0_i32_1 = arith.constant 0 : i32
    return %c0_i32, %c0_i32_0 : i32, i32
  }
  func.func @transform_2(%arg0: i32) -> (i32, i32) {
    %c0_i32 = arith.constant 0 : i32
    %c0_i32_0 = arith.constant 0 : i32
    %c0_i32_1 = arith.constant 0 : i32
    return %c0_i32, %c0_i32_0 : i32, i32
  }
  func.func @transform_3(%arg0: i32) -> (i32, i32) {
    %c0_i32 = arith.constant 0 : i32
    %c0_i32_0 = arith.constant 0 : i32
    return %arg0, %c0_i32 : i32, i32
  }
}

</mosaic_0001>

<bundles_post_ra>
// kernel: tpu_custom_call.1
= control target key start
LH: loop header
LB: loop body
LE: loop exit
PB: predicated region body
PF: predicated region fallthrough
CT: control target
= control target key end

     0   :  { %8 = vsyncpa [#allocation3], 0  ;;  %s295_s0 = inlined_call_operand.hbm [shape: f32[16,16], index: 0, kind: input, shape index: {}]   ;;  %s296_s1 = inlined_call_operand.hbm [shape: bf16[16,32], index: 1, kind: input, shape index: {}]   ;;  %s297_s2 = inlined_call_operand.vmem [shape: f32[1,32], index: 2, kind: input, shape index: {}]   ;;  %s298_s3 = inlined_call_operand.hbm [shape: f32[16,32], index: 3, kind: output, shape index: {}]  }
   0x1   :  { %9 = vsyncpa [#allocation6], 0 }
   0x2   :  { %10 = vsyncpa [#allocation4], 0  ;;  %s221_s12 = smov [#allocation2]   ;;  %s149_s16 = scalar_lea.hbm %s295_s0, 256 }
   0x3   :  { %s16_s13 = sshll.u32 %s221_s12, 4  ;;  %p150_p0 = scmp.ne.s32.totalorder %s295_s0, %s149_s16  ;;  %s17_s13 = int_to_ptr.vmem [resolvable:$true] %s16_s13 }
   0x4   :  { %p153_p1 = scmp.lt.u32.totalorder %s149_s16, %s295_s0 }
   0x6   :  { %p155_p2 = pnand %p153_p1, %p150_p0 }
   0x8   :  { %158 = shalt.err (!%p155_p2)
}
   0x9   :  { %s159_s21 = scalar_lea.vmem %s17_s13, 256  ;;  %p164_p4 = scmp.lt.s32.totalorder %s17_s13, %s17_s13 }
   0xa   :  { %p160_p3 = scmp.ne.s32.totalorder %s17_s13, %s159_s21  ;;  %p165_p5 = scmp.lt.s32.totalorder %s159_s21, %s159_s21 }
   0xc   :  { %p166_p6 = por %p165_p5, %p164_p4 }
   0xe   :  { %p167_p7 = pnand %p166_p6, %p160_p3 }
  0x10   :  { %170 = shalt.err (!%p167_p7)
}
  0x11   :  { %s222_s22 = smov 128   ;;  %s223_s23 = smov 8  }
  0x12   :  { %22 = dma.hbm_to_vmem [thread:$0]  %s295_s0, 256, %s17_s13, [#allocation3], %s222_s22, %s222_s22, %s223_s23  }
  0x13   :  { %s224_s26 = smov [#allocation5]   ;;  %s171_s30 = scalar_lea.hbm %s296_s1, 128 }
  0x14   :  { %s28_s27 = sshll.u32 %s224_s26, 4  ;;  %p172_p8 = scmp.ne.s32.totalorder %s296_s1, %s171_s30  ;;  %s29_s27 = int_to_ptr.vmem [resolvable:$true] %s28_s27 }
  0x15   :  { %p175_p9 = scmp.lt.u32.totalorder %s171_s30, %s296_s1 }
  0x17   :  { %p177_p10 = pnand %p175_p9, %p172_p8 }
  0x19   :  { %180 = shalt.err (!%p177_p10)
}
  0x1a   :  { %s181_s8 = scalar_lea.vmem %s29_s27, 128  ;;  %p186_p12 = scmp.lt.s32.totalorder %s29_s27, %s29_s27 }
  0x1b   :  { %p182_p11 = scmp.ne.s32.totalorder %s29_s27, %s181_s8  ;;  %p187_p13 = scmp.lt.s32.totalorder %s181_s8, %s181_s8 }
  0x1d   :  { %p188_p0 = por %p187_p13, %p186_p12 }
  0x1f   :  { %p189_p1 = pnand %p188_p0, %p182_p11 }
  0x21   :  { %192 = shalt.err (!%p189_p1)
}
  0x22   :  { %s225_s0 = smov 64   ;;  %s226_s9 = smov 4  }
  0x23   :  { %34 = dma.hbm_to_vmem [thread:$0]  %s296_s1, 128, %s29_s27, [#allocation6], %s225_s0, %s225_s0, %s226_s9  }
  0x24   :  { %215 = dma.done.wait [#allocation3], 256  }
  0x25   :  { %216 = vsyncadd [#allocation3], 4294967040 }
  0x26   :  { %217 = dma.done.wait [#allocation6], 128  }
  0x27   :  { %218 = vsyncadd [#allocation6], 4294967168  ;;  %v227_v0 = vmov 0.0   ;;  %vm228_vm0 = vmmov 0   ;;  %v148_v1 = vld [vmem:[#allocation5] sm:$0xff]   ;;  %v44_v2 = vld [vmem:[#allocation2] sm:$0xff] }
  0x28   :  { %133 = vmatprep.subr.bf16.mxu0 %v227_v0  ;;  %135 = vmatprep.mubr.msk.bf16.mxu0 %vm228_vm0, %v227_v0  ;;  %v45_v3 = vld [vmem:[#allocation2 + $0x8] sm:$0xff]  ;;  %vm62_vm1 = vcmask 130048   ;;  %v128_v5 = vld [vmem:[%s297_s2] ss:$0 sm:$0xff]  ;;  %vm107_vm2 = vcmask 261120   ;;  %s229_s1 = smov [#allocation7]  }
  0x29   :  { %134 = vmatpush3.bf16.msra.mxu0 %v148_v1  ;;  %v46_v4 = vpack.c.bf16 %v45_v3, %v44_v2  ;;  %s115_s14 = sshll.u32 %s229_s1, 4  ;;  %s116_s14 = int_to_ptr.vmem [resolvable:$true] %s115_s14 }
  0x2a   :  { %s193_s15 = scalar_lea.vmem %s116_s14, 256  ;;  %p198_p3 = scmp.lt.s32.totalorder %s116_s14, %s116_s14 }
  0x2b   :  { %p194_p2 = scmp.ne.s32.totalorder %s116_s14, %s193_s15  ;;  %p199_p4 = scmp.lt.s32.totalorder %s193_s15, %s193_s15 }
  0x2c   :  { %136 = vmatmul.mubr.msk.bf16.vlgmr.msra.gmra.mrb[0].mxu0 %vm62_vm1, %v46_v4 }
  0x2d   :  { %p200_p5 = por %p199_p4, %p198_p3 }
  0x2f   :  { %p201_p6 = pnand %p200_p5, %p194_p2 }
  0xff   :  { %v100_v6 = vpop.f32.mrb[0].mxu0 }
 0x100   :  { %v101_v7 = vadd.f32 %v128_v5, %v100_v6  ;;  %v137_v8 = vpop.f32.mrb[1].mxu0 }
 0x101   :  { %v103_v9 = vpop.f32.mrb[2].mxu0 }
 0x102   :  { %v104_v10 = vadd.f32 %v128_v5, %v103_v9  ;;  %v138_v11 = vpop.f32.mrb[3].mxu0  ;;  %108 = vst.msk [vmem:[#allocation7] sm:$0xff] %vm107_vm2, %v101_v7 }
 0x104   :  { %109 = vst.msk [vmem:[#allocation7 + $0x8] sm:$0xff] %vm107_vm2, %v104_v10 }
 0x105   :  { %204 = shalt.err (!%p201_p6)
}
 0x106   :  { %s205_s17 = scalar_lea.hbm %s298_s3, 256 }
 0x107   :  { %p206_p7 = scmp.ne.s32.totalorder %s298_s3, %s205_s17  ;;  %p209_p8 = scmp.lt.u32.totalorder %s205_s17, %s298_s3 }
 0x109   :  { %p211_p9 = pnand %p209_p8, %p206_p7 }
 0x10b   :  { %214 = shalt.err (!%p211_p9)
}
 0x10c   :  { %121 = dma.vmem_to_hbm [thread:$0]  %s116_s14, 256, %s298_s3, [#allocation4], %s222_s22, %s222_s22, %s223_s23  }
 0x10d   :  { %219 = dma.done.wait [#allocation4], 256  }
 0x10e   :  { %220 = vsyncadd [#allocation4], 4294967040 }
 0x10f   :  { %125 = vsyncpa [#allocation3], 1 }
 0x110   :  { %126 = vsyncpa [#allocation6], 1 }
 0x111   :  { %127 = vsyncpa [#allocation4], 1 }

</bundles_post_ra>
